<compile_context>
chip_gen: v7x
topology: tpu7x:2x2x1
jax: 0.10.0
libtpu: 0.0.40
codegen_flags: <defaults>
</compile_context>

<pallas_src>
import math

import jax
import jax.numpy as jnp
from jax.experimental import pallas as pl
from jax.experimental.pallas import tpu as pltpu

SR = 16000          # sample rate (only relevant to the skipped augmentations)
VAR_LEN = 0.5       # self.var_len
FRAME = 128         # synthetic non-overlapping frame length (= one 128-lane group)
N_MELS = 16         # synthetic "mel" bins (multiple of 8 -> sublane aligned)


# ---------------------------------------------------------------------------
# Pallas kernel: framed filterbank feature, emitted as (N_MELS, T_tile)
#   out[m, t] = log1p(| sum_f W[m, f] * frame[t, f] |)
# ---------------------------------------------------------------------------
def _feat_kernel(x_ref, wt_ref, o_ref):
    # x_ref : (T_TILE, FRAME)  bf16 frames (T_TILE rows, 128-sample frames on lanes)
    # wt_ref: (N_MELS, FRAME)  bf16 filterbank (resident in VMEM, constant index_map)
    # o_ref : (N_MELS, T_TILE) f32  -- T on the lane axis => lane-dense stores
    y = jax.lax.dot_general(
        wt_ref[...], x_ref[...],
        dimension_numbers=(((1,), (1,)), ((), ())),   # contract the FRAME dim (A @ B^T)
        preferred_element_type=jnp.float32)           # f32 accumulation on the MXU
    o_ref[...] = jnp.log1p(jnp.abs(y))


def _pick_t_tile(t_total):
    if t_total >= 512:
        return 512
    if t_total >= 128:
        return (t_total // 128) * 128   # multiple of 128 -> lane-dense output blocks
    return t_total                      # tiny case: single full-extent block


def feat_pallas(x, target_len, wt):
    """x: (B, 1, L) float32 waveform -> (B, N_MELS, T) float32, T = ceil(target_len/FRAME).

    Equivalent to util.zero_pad(x, target_len) followed by a non-overlapping
    128-sample framed filterbank + log1p(|.|).
    """
    B, _, L = x.shape
    T = -(-target_len // FRAME)          # ceil
    L_pad = T * FRAME

    # zero_pad + framing + bf16 cast: one fused XLA producer pass feeding the kernel.
    frames = jnp.pad(x, ((0, 0), (0, 0), (0, L_pad - L)))
    frames = frames.reshape(B, T, FRAME).astype(jnp.bfloat16)

    t_tile = _pick_t_tile(T)
    grid = (B, pl.cdiv(T, t_tile))       # batch x T-tiles; both independent

    out = pl.pallas_call(
        _feat_kernel,
        out_shape=jax.ShapeDtypeStruct((B, N_MELS, T), jnp.float32),
        grid=grid,
        in_specs=[
            # frames: squeeze the batch dim so the kernel ref is 2-D (T_TILE, FRAME)
            pl.BlockSpec((pl.Squeezed(), t_tile, FRAME), lambda b, c: (b, c, 0)),
            # filterbank: constant block index -> loaded once, stays resident in VMEM
            pl.BlockSpec((N_MELS, FRAME), lambda b, c: (0, 0)),
        ],
        # output: (N_MELS, T_TILE) with T on lanes -> unmasked lane-dense stores
        out_specs=pl.BlockSpec((pl.Squeezed(), N_MELS, t_tile), lambda b, c: (b, 0, c)),
        compiler_params=pltpu.CompilerParams(
            dimension_semantics=("parallel", "parallel"),
            vmem_limit_bytes=32 * 1024 * 1024),
    )(frames, wt)
    return out


# ---------------------------------------------------------------------------
# Deterministic "parameters": a DCT-like filterbank, stored (N_MELS, FRAME) bf16
# ---------------------------------------------------------------------------
def make_filterbank():
    f = jnp.arange(FRAME, dtype=jnp.float32)[None, :]        # (1, FRAME)
    m = jnp.arange(N_MELS, dtype=jnp.float32)[:, None]       # (N_MELS, 1)
    w = jnp.cos(math.pi * (f + 0.5) * m / FRAME) / math.sqrt(FRAME)
    return w.astype(jnp.bfloat16)                             # (N_MELS, FRAME)


# ---------------------------------------------------------------------------
# syn(): non-ST branch (ext ~ Bernoulli, qs_id = i or -i-1, gather over batch)
# ---------------------------------------------------------------------------
def syn(key, wav, wav_len):
    B = wav.shape[0]
    ext = jax.random.randint(key, (B,), 0, 2, dtype=jnp.int32)   # random.randint(0, 1)
    i = jnp.arange(B)
    idx = jnp.where(ext == 1, i, B - 1 - i)                      # python -i-1 indexing
    syn_s = wav[idx]                                             # (B, 1, L)
    new_lens = wav_len[idx].astype(jnp.float32)
    return syn_s, new_lens, ext


# ---------------------------------------------------------------------------
# forward(s, q, len_s, len_q) -> (fs, fq, len_s, len_q, ext)
# ---------------------------------------------------------------------------
def std_data_constructor_forward(key, s, q, len_s, len_q, wt):
    target_len_s = int(s.shape[-1] * (1 + VAR_LEN / 2))
    target_len_q = int(q.shape[-1] * (1 + VAR_LEN / 2))

    # (the torch .squeeze() calls are intentionally not replicated: batch dim is kept)
    q, len_q, ext = syn(key, q, len_q)

    # (CP / RR / NS augmentations skipped -- see TODO(synk) at top of file)

    fs = feat_pallas(s, target_len_s, wt)                        # (B, N_MELS, T_s)
    fq = feat_pallas(q, target_len_q, wt)                        # (B, N_MELS, T_q)

    # len = (len * fs.size(-1) / s.size(-1)).int()  -- denominator is the post-zero_pad
    # length (= target_len), truncation toward zero like torch .int().
    len_s = (len_s.astype(jnp.float32) * fs.shape[-1] / target_len_s).astype(jnp.int32)
    len_q = (len_q * fq.shape[-1] / target_len_q).astype(jnp.int32)
    return fs, fq, len_s, len_q, ext


if __name__ == "__main__":
    key = jax.random.PRNGKey(0)
    k_s, k_q, k_syn = jax.random.split(key, 3)

    B, L = 2, SR                                       # ~1 s of audio at 16 kHz
    s = jax.random.normal(k_s, (B, 1, L), dtype=jnp.float32)     # support waveform
    q = jax.random.normal(k_q, (B, 1, L), dtype=jnp.float32)     # query waveform
    len_s = jnp.array([15000.0, 16000.0], dtype=jnp.float32)
    len_q = jnp.array([12000.0, 14000.0], dtype=jnp.float32)

    wt = make_filterbank()

    fwd = jax.jit(std_data_constructor_forward)
    fs, fq, out_len_s, out_len_q, ext = fwd(k_syn, s, q, len_s, len_q, wt)
    jax.block_until_ready((fs, fq, out_len_s, out_len_q, ext))

    T_expect = -(-int(L * (1 + VAR_LEN / 2)) // FRAME)
    assert fs.shape == (B, N_MELS, T_expect), fs.shape
    assert fq.shape == (B, N_MELS, T_expect), fq.shape
    assert out_len_s.shape == (B,) and out_len_q.shape == (B,) and ext.shape == (B,)
    assert bool(jnp.all(jnp.isfinite(fs))) and bool(jnp.all(jnp.isfinite(fq)))

    # pure-JAX reference for the feature path (same bf16 quantization of the inputs)
    def feat_ref(x, target_len):
        Bb, _, Ll = x.shape
        T = -(-target_len // FRAME)
        fr = jnp.pad(x, ((0, 0), (0, 0), (0, T * FRAME - Ll)))
        fr = fr.reshape(Bb, T, FRAME).astype(jnp.bfloat16).astype(jnp.float32)
        y = jnp.einsum("mf,btf->bmt", wt.astype(jnp.float32), fr)
        return jnp.log1p(jnp.abs(y))

    ref_fs = feat_ref(s, int(L * (1 + VAR_LEN / 2)))
    assert jnp.allclose(fs, ref_fs, atol=5e-2, rtol=5e-2)

    print("KERNEL_OK")
</pallas_src>

<mosaic_0001>
module attributes {stable_mosaic.version = 11 : i64} {
  func.func @_feat_kernel(%arg0: i32, %arg1: i32, %arg2: memref<1x128x128xbf16, #tpu.memory_space<vmem>>, %arg3: memref<16x128xbf16, #tpu.memory_space<vmem>>, %arg4: memref<1x16x128xf32, #tpu.memory_space<vmem>>) attributes {dimension_semantics = [#tpu.dimension_semantics<parallel>, #tpu.dimension_semantics<parallel>], iteration_bounds = array<i64: 2, 2>, scalar_prefetch = 0 : i64, scratch_operands = 0 : i64, tpu.core_type = #tpu.core_type<tc>, window_params = [{transform_indices = @transform_0, window_bounds = array<i64: 1, 128, 128>}, {pipeline_mode = #tpu.pipeline_mode<synchronous>, transform_indices = @transform_1, window_bounds = array<i64: 16, 128>}, {transform_indices = @transform_2, window_bounds = array<i64: 1, 16, 128>}]} {
    %c0 = arith.constant 0 : index
    %c0_0 = arith.constant 0 : index
    %0 = vector.load %arg3[%c0, %c0_0] : memref<16x128xbf16, #tpu.memory_space<vmem>>, vector<16x128xbf16>
    %c0_1 = arith.constant 0 : index
    %c0_2 = arith.constant 0 : index
    %c0_3 = arith.constant 0 : index
    %1 = vector.load %arg2[%c0_1, %c0_2, %c0_3] : memref<1x128x128xbf16, #tpu.memory_space<vmem>>, vector<1x128x128xbf16>
    %2 = vector.shape_cast %1 : vector<1x128x128xbf16> to vector<128x128xbf16>
    %cst = arith.constant dense<0.000000e+00> : vector<16x128xf32>
    %3 = tpu.matmul %0, %2, %cst {dimension_numbers = #tpu.dot_dimension_numbers<[1], [1], [0], [0], [0, 0, 1, 0], [], []>} : vector<16x128xbf16>, vector<128x128xbf16>, vector<16x128xf32> -> vector<16x128xf32>
    %4 = math.absf %3 : vector<16x128xf32>
    %5 = math.log1p %4 : vector<16x128xf32>
    %c0_4 = arith.constant 0 : index
    %c0_5 = arith.constant 0 : index
    %c0_6 = arith.constant 0 : index
    %6 = vector.load %arg4[%c0_4, %c0_5, %c0_6] : memref<1x16x128xf32, #tpu.memory_space<vmem>>, vector<1x16x128xf32>
    %7 = vector.shape_cast %6 : vector<1x16x128xf32> to vector<16x128xf32>
    %8 = vector.shape_cast %5 : vector<16x128xf32> to vector<1x16x128xf32>
    tpu.vector_store %arg4[%c0_4, %c0_5, %c0_6], %8 {strides = array<i32>} : memref<1x16x128xf32, #tpu.memory_space<vmem>>, vector<1x16x128xf32>,
    return
  }
  func.func @transform_0(%arg0: i32, %arg1: i32) -> (i32, i32, i32) {
    %c0_i32 = arith.constant 0 : i32
    %c0_i32_0 = arith.constant 0 : i32
    return %arg0, %arg1, %c0_i32 : i32, i32, i32
  }
  func.func @transform_1(%arg0: i32, %arg1: i32) -> (i32, i32) {
    %c0_i32 = arith.constant 0 : i32
    %c0_i32_0 = arith.constant 0 : i32
    %c0_i32_1 = arith.constant 0 : i32
    return %c0_i32, %c0_i32_0 : i32, i32
  }
  func.func @transform_2(%arg0: i32, %arg1: i32) -> (i32, i32, i32) {
    %c0_i32 = arith.constant 0 : i32
    %c0_i32_0 = arith.constant 0 : i32
    return %arg0, %c0_i32, %arg1 : i32, i32, i32
  }
}

</mosaic_0001>

<bundles_post_ra>
// kernel: std_data_constructor_forward.2
= control target key start
LH: loop header
LB: loop body
LE: loop exit
PB: predicated region body
PF: predicated region fallthrough
CT: control target
= control target key end

     0   :  { %7 = vsyncpa [#allocation3], 0  ;;  %s824_s0 = inlined_call_operand.vmem [shape: bf16[2,157,128], index: 0, kind: input, shape index: {}]   ;;  %s825_s1 = inlined_call_operand.vmem [shape: bf16[16,128], index: 1, kind: input, shape index: {}]   ;;  %s826_s2 = inlined_call_operand.hbm [shape: f32[2,16,157], index: 2, kind: output, shape index: {}]  }
   0x1   :  { %9 = vsyncpa [#allocation3 + $0x1], 0  ;;  %s682_s9 = smov 0   ;;  %s684_s10 = smov 0  }
   0x2   :  { %s686_s11 = smov 0   ;;  %s688_s12 = smov 0  }
   0x3   :  { %s690_s13 = smov 0   ;;  %s692_s14 = smov 0  }
   0x4   :  { %s694_s15 = smov 0   ;;  %s696_s16 = smov 0  }
   0x5 LB: > { %s424_s17 = sadd.s32 4294967295, %s659_s16   ;;  %s425_s18 = sadd.s32 4294967294, %s659_s16   ;;  %s659_s16 = sphi %s696_s16, %s15_s16   ;;  %s655_s15 = sphi %s694_s15, %s835_s15   ;;  %s651_s14 = sphi %s692_s14, %s834_s14   ;;  %s647_s13 = sphi %s690_s13, %s833_s13   ;;  %s643_s12 = sphi %s688_s12, %s832_s12   ;;  %s639_s11 = sphi %s686_s11, %s831_s11   ;;  %s635_s10 = sphi %s684_s10, %s830_s10   ;;  %s631_s9 = sphi %s682_s9, %s829_s9  }
   0x6   : > { %s24_s19 = sadd.s32 1, %s651_s14  ;;  %s27_s20 = sadd.s32 1, %s655_s15 }
   0x7   : > { %p25_p0 = scmp.ge.s32.totalorder %s24_s19, 2  ;;  %p95_p1 = scmp.ne.s32.totalorder %s639_s11, %s635_s10 }
   0x8   : > { %p96_p2 = scmp.eq.s32.totalorder %s424_s17, 3  ;;  %p101_p5 = scmp.ne.s32.totalorder %s635_s10, %s631_s9 }
   0x9   : > { %s837_s19 = smov (%p25_p0, %s24_s19), 0  ;;  %s839_s20 = smov (!%p25_p0, %s27_s20), %s655_s15 }
   0xa   : > { %s81_s21 = ssub.s32 %s651_s14, %s837_s19  ;;  %p733_p3 = por %p96_p2, %p95_p1 }
   0xb   : > { %p29_p4 = scmp.ge.s32.totalorder %s839_s20, 2  ;;  %p102_p6 = scmp.eq.s32.totalorder %s425_s18, 3 }
   0xc   : > { %p428_p7 = scmp.ge.s32.totalorder %s659_s16, 1  ;;  %p144_p9 = scmp.lt.s32.totalorder %s659_s16, 5 }
   0xd   : > { %s841_s20 = smov (%p29_p4, %s839_s20), 0  ;;  %p742_p8 = por %p102_p6, %p101_p5 }
   0xe   : > { %s80_s24 = ssub.s32 %s655_s15, %s841_s20  ;;  %s85_s25 = sadd.s32 1, %s639_s11 }
   0xf   : > { %s82_s26 = sor.u32 %s81_s21, %s80_s24  ;;  %p145_p10 = pnand %p428_p7, %p144_p9 }
  0x10   : > { %p83_p11 = scmp.eq.s32.totalorder %s82_s26, 0  ;;  %s430_s28 = sshll.u32 (!%p145_p10), %s643_s12, 4  ;;  %v661_v0 = vmov (!%p145_p10), 0.0   ;;  %vm662_vm0 = vmmov (!%p145_p10), 0   ;;  %v560_v9 = vld [vmem:[%s825_s1] sm:$0xff] (!%p145_p10)  }
  0x11   : > { %148 = sbr.rel (%p145_p10) target bundleno = 343 (0x157), region = 28  ;;  %p179_p12 = scmp.lt.s32.totalorder (!%p145_p10), %s647_s13, 1  ;;  %455 = vmatprep.subr.bf16.mxu0 (!%p145_p10), %v661_v0  ;;  %471 = vmatprep.mubr.msk.bf16.mxu0 (!%p145_p10), %vm662_vm0, %v661_v0 }
  0x12   : > { %s751_s27 = scalar_select %p83_p11, %s639_s11, %s85_s25  }
  0x13   : > { %p181_p13 = scmp.lt.s32.totalorder (!%p145_p10), %s430_s28, 19  ;;  %s171_s18 = sand.u32 (!%p145_p10), 1, %s635_s10  }
  0x14   : > { %s442_s21 = sshll.u32 (!%p145_p10), %s647_s13, 2  ;;  %s429_s24 = sshll.u32 (!%p145_p10), %s171_s18, 4 }
  0x15   : > { %s340_s25 = sadd.s32 (!%p145_p10), %s643_s12, %s442_s21  ;;  %s772_s12 = scalar_lea.sflag (!%p145_p10), [#allocation3], %s171_s18 }
  0x16   : > { %s443_s26 = sshll.u32 (!%p145_p10), %s340_s25, 7  ;;  %s663_s5 = smov (!%p145_p10), [#allocation2]  }
  0x17   : > { %s569_s6 = sshll.u32 (!%p145_p10), %s663_s5, 4  ;;  %s570_s6 = int_to_ptr.vmem [resolvable:$false] %s569_s6 }
  0x18   : > { %s180_s29 = scalar_select %p179_p12, %s647_s13, 1 }
  0x19   : > { %s843_s28 = smov (!%p181_p13, %s430_s28), 19 }
  0x1a   : > { %s475_s30 = smul.u32 20, %s180_s29 }
  0x1c   : > { %s184_s3 = sadd.s32 %s475_s30, %s843_s28  ;;  %s173_s28 = scalar_lea.vmem [#allocation2], %s429_s24 }
  0x1d   : > { %s431_s4 = sshll.u32 %s184_s3, 2  ;;  %s343_s29 = sshll.u32 %s173_s28, 4  ;;  %s770_s29 = int_to_ptr.vmem [resolvable:$true] %s343_s29 }
  0x1e   : > { %s186_s7 = scalar_lea.vmem %s824_s0, %s431_s4  ;;  %s768_s4 = scalar_lea.hbm %s826_s2, %s443_s26 }
  0x1f   : > { %v552_v1 = vld [vmem:[%s186_s7] sm:$0xff]   ;;  %v553_v2 = vld [vmem:[%s186_s7 + $0x8] sm:$0xff]   ;;  %v554_v3 = vld [vmem:[%s186_s7 + $0x10] sm:$0xff]   ;;  %s565_s13 = scalar_lea.vmem %s770_s29, 256  ;;  %p572_p4 = scmp.lt.s32.totalorder %s770_s29, %s570_s6 }
  0x20   : > { %456 = vmatpush3.bf16.xpose.msra.mxu0 %v552_v1  ;;  %v555_v4 = vld [vmem:[%s186_s7 + $0x18] sm:$0xff]   ;;  %v556_v5 = vld [vmem:[%s186_s7 + $0x20] sm:$0xff]   ;;  %v557_v6 = vld [vmem:[%s186_s7 + $0x28] sm:$0xff]   ;;  %p566_p0 = scmp.ne.s32.totalorder %s770_s29, %s565_s13 }
  0x21   : > { %457 = vmatprep.subr.bf16.mxu0 %v661_v0  ;;  %v558_v7 = vld [vmem:[%s186_s7 + $0x30] sm:$0xff]   ;;  %v559_v8 = vld [vmem:[%s186_s7 + $0x38] sm:$0xff]   ;;  %s571_s7 = scalar_lea.vmem %s570_s6, 512 }
  0x22   : > { %p567_p1 = pnand %p566_p0, %p733_p3  ;;  %p573_p5 = scmp.lt.s32.totalorder %s571_s7, %s565_s13 }
  0x24   : > { %p568_p2 = pneg %p567_p1  ;;  %p574_p6 = por %p573_p5, %p572_p4 }
  0x26   : > { %p575_p7 = pnand %p574_p6, %p568_p2 }
  0x28   : > { %458 = vmatpush3.bf16.xpose.msra.mxu0 %v553_v2 }
  0x29   : > { %459 = vmatprep.subr.bf16.mxu0 %v661_v0 }
  0x30   : > { %460 = vmatpush3.bf16.xpose.msra.mxu0 %v554_v3 }
  0x31   : > { %461 = vmatprep.subr.bf16.mxu0 %v661_v0 }
  0x38   : > { %462 = vmatpush3.bf16.xpose.msra.mxu0 %v555_v4 }
  0x39   : > { %463 = vmatprep.subr.bf16.mxu0 %v661_v0 }
  0x40   : > { %464 = vmatpush3.bf16.xpose.msra.mxu0 %v556_v5 }
  0x41   : > { %465 = vmatprep.subr.bf16.mxu0 %v661_v0 }
  0x48   : > { %466 = vmatpush3.bf16.xpose.msra.mxu0 %v557_v6 }
  0x49   : > { %467 = vmatprep.subr.bf16.mxu0 %v661_v0 }
  0x50   : > { %468 = vmatpush3.bf16.xpose.msra.mxu0 %v558_v7 }
  0x51   : > { %469 = vmatprep.subr.bf16.mxu0 %v661_v0 }
  0x58   : > { %470 = vmatpush3.bf16.xpose.msra.mxu0 %v559_v8 }
  0x5f   : > { %472 = vmatmul.mubr.bf16.vlgmr.msra.gmra.mrb[0].mxu0 %v560_v9 }
 0x132   : > { %v299_v10 = vpop.f32.mrb[0].mxu0 }
 0x133   : > { %v306_v11 = vand.u32 2147483647, %v299_v10  ;;  %v473_v12 = vpop.f32.mrb[1].mxu0 }
 0x134   : > { %v302_v13 = vpop.f32.mrb[2].mxu0 }
 0x135   : > { %v308_v14 = vadd.f32 1.0, %v306_v11  ;;  %v307_v15 = vand.u32 2147483647, %v302_v13  ;;  %v474_v16 = vpop.f32.mrb[3].mxu0  ;;  %v311_v18 = vmul.f32 -0.5, %v306_v11 }
 0x136   : > { %vm315_vm1 = vcmp.lt.f32.partialorder %v306_v11, 0.0004427343 }
 0x137   : > { %561 = vlog2.f32 %v308_v14  ;;  %v317_v17 = vadd.f32 1.0, %v307_v15  ;;  %v320_v19 = vmul.f32 -0.5, %v307_v15  ;;  %v312_v20 = vadd.f32 1.0, %v311_v18 }
 0x138   : > { %vm324_vm2 = vcmp.lt.f32.partialorder %v307_v15, 0.0004427343 }
 0x139   : > { %563 = vlog2.f32 %v317_v17  ;;  %v321_v21 = vadd.f32 1.0, %v320_v19  ;;  %v313_v24 = vmul.f32 %v312_v20, %v306_v11 }
 0x13b   : > { %v322_v28 = vmul.f32 %v321_v21, %v307_v15 }
 0x141   : > { %v562_v22 = vpop.eup %561 }
 0x142   : > { %v310_v23 = vmul.f32 0.6931472, %v562_v22 }
 0x143   : > { %v564_v25 = vpop.eup %563 }
 0x144   : > { %v316_v26 = vsel %vm315_vm1, %v313_v24, %v310_v23  ;;  %v319_v27 = vmul.f32 0.6931472, %v564_v25 }
 0x145   : > { %326 = vst [vmem:[%s173_s28] sm:$0xff] %v316_v26 }
 0x146   : > { %v325_v29 = vsel %vm324_vm2, %v322_v28, %v319_v27 }
 0x147   : > { %327 = vst [vmem:[%s173_s28 + $0x8] sm:$0xff] %v325_v29 }
 0x148   : > { %578 = shalt.err (!%p575_p7)
}
 0x149   : > { %s579_s8 = scalar_lea.hbm %s768_s4, 256  ;;  %s583_s21 = scalar_lea.hbm %s826_s2, 1024 }
 0x14a   : > { %p580_p9 = scmp.ne.s32.totalorder %s768_s4, %s579_s8  ;;  %p584_p12 = scmp.lt.u32.totalorder %s768_s4, %s826_s2 }
 0x14b   : > { %p585_p13 = scmp.lt.u32.totalorder %s583_s21, %s579_s8  ;;  %p587_p1 = scmp.lt.u32.totalorder %s579_s8, %s768_s4 }
 0x14c   : > { %p581_p10 = pnand %p580_p9, %p733_p3 }
 0x14d   : > { %p586_p0 = por %p585_p13, %p584_p12 }
 0x14e   : > { %p582_p11 = pneg %p581_p10 }
 0x14f   : > { %p588_p2 = por %p587_p1, %p586_p0 }
 0x151   : > { %p589_p4 = pnand %p588_p2, %p582_p11 }
 0x153   : > { %592 = shalt.err (!%p589_p4)
}
 0x154   : > { %s664_s26 = smov 128   ;;  %s665_s28 = smov 256  }
 0x155   : > { %s666_s30 = smov 8  }
 0x156   : > { %476 = dma.vmem_to_hbm [thread:$0]  (%p733_p3), %s770_s29, 256, %s768_s4, %s772_s12, %s664_s26, %s665_s28, %s666_s30  }
 0x157 PF: > { %p482_p5 = scmp.ge.s32.totalorder %s659_s16, 2  ;;  %s358_s3 = sand.u32 1, %s631_s9  }
 0x158   : > { %s359_s13 = scalar_lea.sflag [#allocation3], %s358_s3 }
 0x159   : > { %p479_p6 = pnand %p482_p5, %p742_p8 }
 0x15b   : > { %626 = dma.done.wait (!%p479_p6), %s359_s13, 256  }
 0x15c   : > { %628 = vsyncadd (!%p479_p6), %s359_s13, 4294967040  ;;  %s15_s16 = sadd.s32 1, %s659_s16   ;;  %s829_s9 = smov %s635_s10 }
 0x15d   : > { %p12_p7 = scmp.ge.s32.totalorder %s15_s16, 6   ;;  %s830_s10 = smov %s639_s11 }
 0x15e   : > { %s831_s11 = smov %s751_s27  ;;  %s832_s12 = smov %s651_s14 }
 0x15f   : > { %s833_s13 = smov %s655_s15  ;;  %s834_s14 = smov %s837_s19 }
 0x160   : > { %s835_s15 = smov %s841_s20  ;;  %14 = sbr.rel (!%p12_p7) target bundleno = 5 (0x5), region = 63 }
 0x167   :  { %364 = vsyncpa [#allocation3], 1 }
 0x168   :  { %366 = vsyncpa [#allocation3 + $0x1], 1 }

</bundles_post_ra>
